<compile_context>
chip_gen: v5e
topology: v5e:2x2
jax: 0.10.0
libtpu: 0.0.40
codegen_flags: <defaults>
</compile_context>

<pallas_src>
import functools

import jax
import jax.numpy as jnp
from jax import lax
from jax.experimental import pallas as pl
from jax.experimental.pallas import tpu as pltpu

_MIB = 1024 * 1024


def _round_up(x, m):
    return ((x + m - 1) // m) * m


def _vmem_capacity_bytes():
    """Per-TensorCore VMEM capacity; conservative (v7x-sized) fallback."""
    try:
        info = pltpu.get_tpu_info()
        cap = int(getattr(info, "vmem_capacity_bytes"))
        if cap > 0:
            return cap
    except Exception:
        pass
    return 64 * _MIB


# ---------------------------------------------------------------------------
# Kernel body.
# refs layout: x_ref, (w0, b0, ..., w_{H-1}, b_{H-1}), w_last, b_last(SMEM), o_ref
#   x_ref:   (bt, emb_pad)       f32 (or bf16)   -- cast to bf16 in-kernel
#   w_i:     (in_pad, hid_pad)   bf16            b_i: (1, hid_pad) f32
#   w_last:  (8, k_pad)          bf16 (row 0 = real weights, rows 1..7 zero)
#   b_last:  (1,)                f32 in SMEM
#   o_ref:   (1, 1, bt)          f32             -- lane-dense logits/probs row
# ---------------------------------------------------------------------------
def _discriminator_kernel(n_hidden, *refs):
    x_ref = refs[0]
    base = 1 + 2 * n_hidden
    wl_ref = refs[base]
    bl_ref = refs[base + 1]
    o_ref = refs[base + 2]

    # Cast the streamed f32 tile to bf16 in-kernel (cheap VPU op hidden under the
    # first MXU pass) instead of paying an extra HBM pass in the wrapper.
    h = x_ref[...].astype(jnp.bfloat16)

    for i in range(n_hidden):
        w_ref = refs[1 + 2 * i]
        b_ref = refs[2 + 2 * i]
        acc = jnp.dot(h, w_ref[...], preferred_element_type=jnp.float32)
        acc = acc + b_ref[...]                 # f32 bias, broadcast (1,N)->(bt,N)
        acc = jnp.maximum(acc, 0.2 * acc)      # LeakyReLU(0.2): mul+max (slope < 1)
        h = acc.astype(jnp.bfloat16)           # bf16 operand for the next MXU pass

    # Final Linear(K -> 1) as a transposed-RHS bf16 matmul: (8,K) @ (bt,K)^T -> (8,bt).
    # Row 0 of w_last holds the real weights; this yields a lane-dense logits row
    # directly (no 1-lane-wide column, no masked vst on the output path).
    res = lax.dot_general(
        wl_ref[...], h,
        dimension_numbers=(((1,), (1,)), ((), ())),
        preferred_element_type=jnp.float32,
    )
    logits = res[0:1, :] + bl_ref[0]           # (1, bt) + SMEM scalar bias
    # Exact sigmoid: applied to a single (1, bt) row, so the divide is negligible.
    o_ref[0] = 1.0 / (1.0 + jnp.exp(-logits))


# ---------------------------------------------------------------------------
# Parameter preparation: pad lanes to 128, cast matmul weights to bf16,
# reshape the final layer for the lane-dense epilogue.
# ---------------------------------------------------------------------------
def _prepare_kernel_params(weights, biases, emb_pad):
    n_hidden = len(weights) - 1
    hid_pad = _round_up(weights[0].shape[1], 128) if n_hidden > 0 else None

    hw, hb = [], []
    for i in range(n_hidden):
        w = jnp.asarray(weights[i], jnp.float32)
        b = jnp.asarray(biases[i], jnp.float32).reshape(1, -1)
        in_dim, out_dim = w.shape
        in_pad = emb_pad if i == 0 else hid_pad
        wp = jnp.zeros((in_pad, hid_pad), jnp.float32).at[:in_dim, :out_dim].set(w)
        bp = jnp.zeros((1, hid_pad), jnp.float32).at[:, :out_dim].set(b)
        hw.append(wp.astype(jnp.bfloat16))
        hb.append(bp)

    wl = jnp.asarray(weights[-1], jnp.float32)          # (K_in, 1)
    k_in = wl.shape[0]
    k_pad = hid_pad if n_hidden > 0 else emb_pad
    wlp = (jnp.zeros((8, k_pad), jnp.float32)
           .at[0, :k_in].set(wl[:, 0])
           .astype(jnp.bfloat16))
    blp = jnp.asarray(biases[-1], jnp.float32).reshape(1)
    return hw, hb, wlp, blp, hid_pad, k_pad


def _param_vmem_bytes(emb_pad, hid_pad, k_pad, n_hidden, buffers):
    total = 0
    for i in range(n_hidden):
        in_pad = emb_pad if i == 0 else hid_pad
        total += in_pad * hid_pad * 2      # bf16 weight
        total += hid_pad * 4               # f32 bias
    total += 8 * k_pad * 2                 # bf16 final-layer weights
    return total * buffers


def _pick_batch_tile(B, emb_pad, hid_pad, x_itemsize, param_bytes, budget, prefer_multi):
    """Largest lane-dense (multiple-of-128) batch tile whose full VMEM footprint
    (streamed x tile + resident params + live activations + output slab) fits."""
    feat = max(hid_pad, emb_pad)

    def step_bytes(bt):
        x_dma = bt * emb_pad * x_itemsize * 2        # input tile, double-buffered
        act = bt * (emb_pad * 2 + feat * 10)         # bf16 x copy + f32/bf16 acts + slack
        out = bt * 4 * 2                             # (1, bt) f32 slab, double-buffered
        return x_dma + act + out

    def fits(bt):
        return param_bytes + step_bytes(bt) <= budget

    b_ceil = _round_up(max(B, 8), 128)
    candidates = [c for c in (4096, 2048, 1024, 512, 256, 128) if c <= b_ceil]
    fitting = [c for c in candidates if fits(c)]
    if not fitting:
        # VMEM-constrained fallback: shrink below 128 rows rather than spill / OOM.
        for c in (64, 32, 16, 8):
            if fits(c):
                return c
        return 8
    if prefer_multi:
        # v7x megacore: prefer >= 2 grid steps, but only with non-trivial tiles.
        multi = [c for c in fitting if c >= 256 and pl.cdiv(b_ceil, c) >= 2]
        if multi:
            return multi[0]
    return fitting[0]


# ---------------------------------------------------------------------------
# Wrapper
# ---------------------------------------------------------------------------
def discriminator_forward(x, weights, biases, *, batch_tile=None):
    """Run the discriminator MLP via a single Pallas kernel.

    x:        [B, emb_dim] float32 (bf16 also accepted)
    weights:  list of [in_dim, out_dim] float32 (last out_dim == 1)
    biases:   list of [1, out_dim] float32
    returns:  [B] float32 (sigmoid probabilities), matching .view(-1)
    """
    B, emb_dim = x.shape
    n_hidden = len(weights) - 1
    assert weights[0].shape[0] == emb_dim
    assert weights[-1].shape[1] == 1

    emb_pad = _round_up(emb_dim, 128)
    hw, hb, wl, bl, hid_pad, k_pad = _prepare_kernel_params(weights, biases, emb_pad)
    hid_pad_eff = hid_pad if hid_pad is not None else emb_pad

    # Generation-aware VMEM budgeting (v7x: 64 MiB/TC; v5e/v6e: 128 MiB).
    vmem_cap = _vmem_capacity_bytes()
    if vmem_cap <= 64 * _MIB:
        budget = 44 * _MIB
        prefer_multi = True       # v7x: 2 TensorCores -> let megacore split the grid
    else:
        budget = 88 * _MIB
        prefer_multi = False      # single-TC chips: one big tile beats extra steps
    vmem_limit = int(min(budget + 8 * _MIB, vmem_cap - 8 * _MIB))

    # Accept bf16 inputs directly; otherwise stream f32 (no wrapper-side cast pass).
    x = jnp.asarray(x)
    if x.dtype != jnp.bfloat16:
        x = x.astype(jnp.float32)
    x_itemsize = 2 if x.dtype == jnp.bfloat16 else 4

    param_bytes = _param_vmem_bytes(emb_pad, hid_pad_eff, k_pad, n_hidden, buffers=1)
    if batch_tile is None:
        batch_tile = _pick_batch_tile(B, emb_pad, hid_pad_eff, x_itemsize,
                                      param_bytes, budget, prefer_multi)

    grid0 = pl.cdiv(B, batch_tile)
    b_pad = grid0 * batch_tile

    # Pad batch + feature axes in a single pass (only if needed). Padded feature
    # lanes hit zero-padded weight rows; padded batch rows are dropped at the end.
    if b_pad != B or emb_pad != emb_dim:
        x = jnp.pad(x, ((0, b_pad - B), (0, emb_pad - emb_dim)))

    kernel = functools.partial(_discriminator_kernel, n_hidden)
    args = [x]
    for w, b in zip(hw, hb):
        args += [w, b]
    args += [wl, bl]

    def run(single_buffer_params):
        # Grid-invariant parameters: request a single VMEM buffer (they never change
        # across grid steps), halving resident param VMEM -> room for larger tiles.
        param_mode = {"pipeline_mode": pl.Buffered(1)} if single_buffer_params else {}

        in_specs = [pl.BlockSpec((batch_tile, emb_pad), lambda i: (i, 0))]
        for w, b in zip(hw, hb):
            in_specs.append(pl.BlockSpec(w.shape, lambda i: (0, 0), **param_mode))
            in_specs.append(pl.BlockSpec(b.shape, lambda i: (0, 0), **param_mode))
        in_specs.append(pl.BlockSpec(wl.shape, lambda i: (0, 0), **param_mode))
        in_specs.append(pl.BlockSpec(memory_space=pltpu.MemorySpace.SMEM))  # scalar bias

        out_specs = pl.BlockSpec((1, 1, batch_tile), lambda i: (i, 0, 0))
        out_shape = jax.ShapeDtypeStruct((grid0, 1, batch_tile), jnp.float32)

        return pl.pallas_call(
            kernel,
            out_shape=out_shape,
            grid_spec=pltpu.PrefetchScalarGridSpec(
                num_scalar_prefetch=0,
                grid=(grid0,),
                in_specs=in_specs,
                out_specs=out_specs,
            ),
            compiler_params=pltpu.CompilerParams(
                dimension_semantics=("parallel",),
                vmem_limit_bytes=vmem_limit,
            ),
        )(*args)

    try:
        out = run(single_buffer_params=True)
    except Exception:
        # Safe fallback if single-buffered pipeline_mode is rejected by the compiler.
        out = run(single_buffer_params=False)

    return out.reshape(-1)[:B]


# ---------------------------------------------------------------------------
# Deterministic parameter construction (PyTorch nn.Linear-style init shapes).
# ---------------------------------------------------------------------------
def make_params(key, emb_dim, dis_layers, dis_hid_dim):
    weights, biases = [], []
    for i in range(dis_layers + 1):
        in_dim = emb_dim if i == 0 else dis_hid_dim
        out_dim = 1 if i == dis_layers else dis_hid_dim
        key, kw, kb = jax.random.split(key, 3)
        bound = 1.0 / (in_dim ** 0.5)
        # stored as [in_dim, out_dim] (transposed vs. PyTorch's [out, in])
        w = jax.random.uniform(kw, (in_dim, out_dim), jnp.float32, -bound, bound)
        b = jax.random.uniform(kb, (1, out_dim), jnp.float32, -bound, bound)
        weights.append(w)
        biases.append(b)
    return weights, biases


def reference_forward(x, weights, biases):
    """Pure-JAX f32 reference for correctness check (eval-mode: dropout = identity)."""
    h = x
    n = len(weights)
    for i, (w, b) in enumerate(zip(weights, biases)):
        h = h @ w + b
        if i < n - 1:
            h = jnp.where(h > 0, h, 0.2 * h)
    return jax.nn.sigmoid(h).reshape(-1)


if __name__ == "__main__":
    # Small, module-consistent shapes:
    #   params.emb_dim_autoenc = 32, params.dis_layers = 2, params.dis_hid_dim = 64
    emb_dim = 32
    dis_layers = 2
    dis_hid_dim = 64
    batch = 16

    key = jax.random.PRNGKey(0)
    key, kx = jax.random.split(key)
    x = jax.random.normal(kx, (batch, emb_dim), dtype=jnp.float32)

    weights, biases = make_params(key, emb_dim, dis_layers, dis_hid_dim)

    out = discriminator_forward(x, weights, biases)
    out = jax.block_until_ready(out)

    ref = reference_forward(x, weights, biases)

    assert out.shape == (batch,), out.shape
    assert bool(jnp.all(jnp.isfinite(out)))
    # bf16 MXU matmuls -> loosened absolute tolerance on [0,1] sigmoid outputs
    assert float(jnp.max(jnp.abs(out - ref))) < 2e-2, (out, ref)

    print("KERNEL_OK")
</pallas_src>

<mosaic_0001>
module attributes {stable_mosaic.version = 11 : i64} {
  func.func @_discriminator_kernel(%arg0: i32, %arg1: memref<128x128xf32, #tpu.memory_space<vmem>>, %arg2: memref<128x128xbf16, #tpu.memory_space<vmem>>, %arg3: memref<1x128xf32, #tpu.memory_space<vmem>>, %arg4: memref<128x128xbf16, #tpu.memory_space<vmem>>, %arg5: memref<1x128xf32, #tpu.memory_space<vmem>>, %arg6: memref<8x128xbf16, #tpu.memory_space<vmem>>, %arg7: memref<1xf32, #tpu.memory_space<smem>>, %arg8: memref<1x1x128xf32, #tpu.memory_space<vmem>>) attributes {dimension_semantics = [#tpu.dimension_semantics<parallel>], iteration_bounds = array<i64: 1>, scalar_prefetch = 0 : i64, scratch_operands = 0 : i64, tpu.core_type = #tpu.core_type<tc>, window_params = [{transform_indices = @transform_0, window_bounds = array<i64: 128, 128>}, {pipeline_mode = #tpu.pipeline_mode<synchronous>, transform_indices = @transform_1, window_bounds = array<i64: 128, 128>}, {pipeline_mode = #tpu.pipeline_mode<synchronous>, transform_indices = @transform_2, window_bounds = array<i64: 1, 128>}, {pipeline_mode = #tpu.pipeline_mode<synchronous>, transform_indices = @transform_3, window_bounds = array<i64: 128, 128>}, {pipeline_mode = #tpu.pipeline_mode<synchronous>, transform_indices = @transform_4, window_bounds = array<i64: 1, 128>}, {pipeline_mode = #tpu.pipeline_mode<synchronous>, transform_indices = @transform_5, window_bounds = array<i64: 8, 128>}, {transform_indices = @transform_6, window_bounds = array<i64: 1>}, {transform_indices = @transform_7, window_bounds = array<i64: 1, 1, 128>}]} {
    %c0 = arith.constant 0 : index
    %c0_0 = arith.constant 0 : index
    %0 = vector.load %arg1[%c0, %c0_0] : memref<128x128xf32, #tpu.memory_space<vmem>>, vector<128x128xf32>
    %1 = arith.truncf %0 : vector<128x128xf32> to vector<128x128xbf16>
    %c0_1 = arith.constant 0 : index
    %c0_2 = arith.constant 0 : index
    %2 = vector.load %arg2[%c0_1, %c0_2] : memref<128x128xbf16, #tpu.memory_space<vmem>>, vector<128x128xbf16>
    %cst = arith.constant dense<0.000000e+00> : vector<128x128xf32>
    %3 = tpu.matmul %1, %2, %cst {dimension_numbers = #tpu.dot_dimension_numbers<[1], [0], [0], [1], [0, 0, 1, 1], [], []>} : vector<128x128xbf16>, vector<128x128xbf16>, vector<128x128xf32> -> vector<128x128xf32>
    %c0_3 = arith.constant 0 : index
    %c0_4 = arith.constant 0 : index
    %4 = vector.load %arg3[%c0_3, %c0_4] : memref<1x128xf32, #tpu.memory_space<vmem>>, vector<1x128xf32>
    %5 = vector.broadcast %4 : vector<1x128xf32> to vector<128x128xf32>
    %6 = arith.addf %3, %5 : vector<128x128xf32>
    %cst_5 = arith.constant 2.000000e-01 : f32
    %7 = vector.broadcast %cst_5 : f32 to vector<128x128xf32>
    %8 = arith.mulf %7, %6 : vector<128x128xf32>
    %9 = arith.maximumf %6, %8 : vector<128x128xf32>
    %10 = arith.truncf %9 : vector<128x128xf32> to vector<128x128xbf16>
    %c0_6 = arith.constant 0 : index
    %c0_7 = arith.constant 0 : index
    %11 = vector.load %arg4[%c0_6, %c0_7] : memref<128x128xbf16, #tpu.memory_space<vmem>>, vector<128x128xbf16>
    %cst_8 = arith.constant dense<0.000000e+00> : vector<128x128xf32>
    %12 = tpu.matmul %10, %11, %cst_8 {dimension_numbers = #tpu.dot_dimension_numbers<[1], [0], [0], [1], [0, 0, 1, 1], [], []>} : vector<128x128xbf16>, vector<128x128xbf16>, vector<128x128xf32> -> vector<128x128xf32>
    %c0_9 = arith.constant 0 : index
    %c0_10 = arith.constant 0 : index
    %13 = vector.load %arg5[%c0_9, %c0_10] : memref<1x128xf32, #tpu.memory_space<vmem>>, vector<1x128xf32>
    %14 = vector.broadcast %13 : vector<1x128xf32> to vector<128x128xf32>
    %15 = arith.addf %12, %14 : vector<128x128xf32>
    %cst_11 = arith.constant 2.000000e-01 : f32
    %16 = vector.broadcast %cst_11 : f32 to vector<128x128xf32>
    %17 = arith.mulf %16, %15 : vector<128x128xf32>
    %18 = arith.maximumf %15, %17 : vector<128x128xf32>
    %19 = arith.truncf %18 : vector<128x128xf32> to vector<128x128xbf16>
    %c0_12 = arith.constant 0 : index
    %c0_13 = arith.constant 0 : index
    %20 = vector.load %arg6[%c0_12, %c0_13] : memref<8x128xbf16, #tpu.memory_space<vmem>>, vector<8x128xbf16>
    %cst_14 = arith.constant dense<0.000000e+00> : vector<8x128xf32>
    %21 = tpu.matmul %20, %19, %cst_14 {dimension_numbers = #tpu.dot_dimension_numbers<[1], [1], [0], [0], [0, 0, 1, 0], [], []>} : vector<8x128xbf16>, vector<128x128xbf16>, vector<8x128xf32> -> vector<8x128xf32>
    %22 = vector.extract_strided_slice %21 {offsets = [0, 0], sizes = [1, 128], strides = [1, 1]} : vector<8x128xf32> to vector<1x128xf32>
    %c0_15 = arith.constant 0 : index
    %23 = memref.load %arg7[%c0_15] : memref<1xf32, #tpu.memory_space<smem>>
    %24 = vector.broadcast %23 : f32 to vector<1x128xf32>
    %25 = arith.addf %22, %24 : vector<1x128xf32>
    %cst_16 = arith.constant 0.000000e+00 : f32
    %26 = vector.broadcast %cst_16 : f32 to vector<1x128xf32>
    %27 = arith.subf %26, %25 : vector<1x128xf32>
    %28 = math.exp %27 : vector<1x128xf32>
    %cst_17 = arith.constant 1.000000e+00 : f32
    %29 = vector.broadcast %cst_17 : f32 to vector<1x128xf32>
    %30 = arith.addf %29, %28 : vector<1x128xf32>
    %cst_18 = arith.constant 1.000000e+00 : f32
    %31 = vector.broadcast %cst_18 : f32 to vector<1x128xf32>
    %32 = arith.divf %31, %30 : vector<1x128xf32>
    %c0_19 = arith.constant 0 : index
    %c0_20 = arith.constant 0 : index
    %c0_21 = arith.constant 0 : index
    %33 = vector.load %arg8[%c0_19, %c0_20, %c0_21] : memref<1x1x128xf32, #tpu.memory_space<vmem>>, vector<1x1x128xf32>
    %34 = vector.shape_cast %33 : vector<1x1x128xf32> to vector<1x128xf32>
    %35 = vector.shape_cast %32 : vector<1x128xf32> to vector<1x1x128xf32>
    tpu.vector_store %arg8[%c0_19, %c0_20, %c0_21], %35 {strides = array<i32>} : memref<1x1x128xf32, #tpu.memory_space<vmem>>, vector<1x1x128xf32>,
    return
  }
  func.func @transform_0(%arg0: i32) -> (i32, i32) {
    %c0_i32 = arith.constant 0 : i32
    %c0_i32_0 = arith.constant 0 : i32
    return %arg0, %c0_i32 : i32, i32
  }
  func.func @transform_1(%arg0: i32) -> (i32, i32) {
    %c0_i32 = arith.constant 0 : i32
    %c0_i32_0 = arith.constant 0 : i32
    %c0_i32_1 = arith.constant 0 : i32
    return %c0_i32, %c0_i32_0 : i32, i32
  }
  func.func @transform_2(%arg0: i32) -> (i32, i32) {
    %c0_i32 = arith.constant 0 : i32
    %c0_i32_0 = arith.constant 0 : i32
    %c0_i32_1 = arith.constant 0 : i32
    return %c0_i32, %c0_i32_0 : i32, i32
  }
  func.func @transform_3(%arg0: i32) -> (i32, i32) {
    %c0_i32 = arith.constant 0 : i32
    %c0_i32_0 = arith.constant 0 : i32
    %c0_i32_1 = arith.constant 0 : i32
    return %c0_i32, %c0_i32_0 : i32, i32
  }
  func.func @transform_4(%arg0: i32) -> (i32, i32) {
    %c0_i32 = arith.constant 0 : i32
    %c0_i32_0 = arith.constant 0 : i32
    %c0_i32_1 = arith.constant 0 : i32
    return %c0_i32, %c0_i32_0 : i32, i32
  }
  func.func @transform_5(%arg0: i32) -> (i32, i32) {
    %c0_i32 = arith.constant 0 : i32
    %c0_i32_0 = arith.constant 0 : i32
    %c0_i32_1 = arith.constant 0 : i32
    return %c0_i32, %c0_i32_0 : i32, i32
  }
  func.func @transform_6(%arg0: i32) -> i32 {
    %c0_i32 = arith.constant 0 : i32
    %c0_i32_0 = arith.constant 0 : i32
    return %c0_i32 : i32
  }
  func.func @transform_7(%arg0: i32) -> (i32, i32, i32) {
    %c0_i32 = arith.constant 0 : i32
    %c0_i32_0 = arith.constant 0 : i32
    %c0_i32_1 = arith.constant 0 : i32
    return %arg0, %c0_i32, %c0_i32_0 : i32, i32, i32
  }
}

module attributes {stable_mosaic.version = 11 : i64} {
  func.func @_discriminator_kernel(%arg0: i32, %arg1: memref<128x128xf32, #tpu.memory_space<vmem>>, %arg2: memref<128x128xbf16, #tpu.memory_space<vmem>>, %arg3: memref<1x128xf32, #tpu.memory_space<vmem>>, %arg4: memref<128x128xbf16, #tpu.memory_space<vmem>>, %arg5: memref<1x128xf32, #tpu.memory_space<vmem>>, %arg6: memref<8x128xbf16, #tpu.memory_space<vmem>>, %arg7: memref<1xf32, #tpu.memory_space<smem>>, %arg8: memref<1x1x128xf32, #tpu.memory_space<vmem>>) attributes {dimension_semantics = [#tpu.dimension_semantics<parallel>], iteration_bounds = array<i64: 1>, scalar_prefetch = 0 : i64, scratch_operands = 0 : i64, tpu.core_type = #tpu.core_type<tc>, window_params = [{transform_indices = @transform_0, window_bounds = array<i64: 128, 128>}, {pipeline_mode = #tpu.pipeline_mode<synchronous>, transform_indices = @transform_1, window_bounds = array<i64: 128, 128>}, {pipeline_mode = #tpu.pipeline_mode<synchronous>, transform_indices = @transform_2, window_bounds = array<i64: 1, 128>}, {pipeline_mode = #tpu.pipeline_mode<synchronous>, transform_indices = @transform_3, window_bounds = array<i64: 128, 128>}, {pipeline_mode = #tpu.pipeline_mode<synchronous>, transform_indices = @transform_4, window_bounds = array<i64: 1, 128>}, {pipeline_mode = #tpu.pipeline_mode<synchronous>, transform_indices = @transform_5, window_bounds = array<i64: 8, 128>}, {transform_indices = @transform_6, window_bounds = array<i64: 1>}, {transform_indices = @transform_7, window_bounds = array<i64: 1, 1, 128>}]} {
    %c0 = arith.constant 0 : index
    %c0_0 = arith.constant 0 : index
    %0 = vector.load %arg1[%c0, %c0_0] : memref<128x128xf32, #tpu.memory_space<vmem>>, vector<128x128xf32>
    %1 = arith.truncf %0 : vector<128x128xf32> to vector<128x128xbf16>
    %c0_1 = arith.constant 0 : index
    %c0_2 = arith.constant 0 : index
    %2 = vector.load %arg2[%c0_1, %c0_2] : memref<128x128xbf16, #tpu.memory_space<vmem>>, vector<128x128xbf16>
    %cst = arith.constant dense<0.000000e+00> : vector<128x128xf32>
    %3 = tpu.matmul %1, %2, %cst {dimension_numbers = #tpu.dot_dimension_numbers<[1], [0], [0], [1], [0, 0, 1, 1], [], []>} : vector<128x128xbf16>, vector<128x128xbf16>, vector<128x128xf32> -> vector<128x128xf32>
    %c0_3 = arith.constant 0 : index
    %c0_4 = arith.constant 0 : index
    %4 = vector.load %arg3[%c0_3, %c0_4] : memref<1x128xf32, #tpu.memory_space<vmem>>, vector<1x128xf32>
    %5 = vector.broadcast %4 : vector<1x128xf32> to vector<128x128xf32>
    %6 = arith.addf %3, %5 : vector<128x128xf32>
    %cst_5 = arith.constant 2.000000e-01 : f32
    %7 = vector.broadcast %cst_5 : f32 to vector<128x128xf32>
    %8 = arith.mulf %7, %6 : vector<128x128xf32>
    %9 = arith.maximumf %6, %8 : vector<128x128xf32>
    %10 = arith.truncf %9 : vector<128x128xf32> to vector<128x128xbf16>
    %c0_6 = arith.constant 0 : index
    %c0_7 = arith.constant 0 : index
    %11 = vector.load %arg4[%c0_6, %c0_7] : memref<128x128xbf16, #tpu.memory_space<vmem>>, vector<128x128xbf16>
    %cst_8 = arith.constant dense<0.000000e+00> : vector<128x128xf32>
    %12 = tpu.matmul %10, %11, %cst_8 {dimension_numbers = #tpu.dot_dimension_numbers<[1], [0], [0], [1], [0, 0, 1, 1], [], []>} : vector<128x128xbf16>, vector<128x128xbf16>, vector<128x128xf32> -> vector<128x128xf32>
    %c0_9 = arith.constant 0 : index
    %c0_10 = arith.constant 0 : index
    %13 = vector.load %arg5[%c0_9, %c0_10] : memref<1x128xf32, #tpu.memory_space<vmem>>, vector<1x128xf32>
    %14 = vector.broadcast %13 : vector<1x128xf32> to vector<128x128xf32>
    %15 = arith.addf %12, %14 : vector<128x128xf32>
    %cst_11 = arith.constant 2.000000e-01 : f32
    %16 = vector.broadcast %cst_11 : f32 to vector<128x128xf32>
    %17 = arith.mulf %16, %15 : vector<128x128xf32>
    %18 = arith.maximumf %15, %17 : vector<128x128xf32>
    %19 = arith.truncf %18 : vector<128x128xf32> to vector<128x128xbf16>
    %c0_12 = arith.constant 0 : index
    %c0_13 = arith.constant 0 : index
    %20 = vector.load %arg6[%c0_12, %c0_13] : memref<8x128xbf16, #tpu.memory_space<vmem>>, vector<8x128xbf16>
    %cst_14 = arith.constant dense<0.000000e+00> : vector<8x128xf32>
    %21 = tpu.matmul %20, %19, %cst_14 {dimension_numbers = #tpu.dot_dimension_numbers<[1], [1], [0], [0], [0, 0, 1, 0], [], []>} : vector<8x128xbf16>, vector<128x128xbf16>, vector<8x128xf32> -> vector<8x128xf32>
    %22 = vector.extract_strided_slice %21 {offsets = [0, 0], sizes = [1, 128], strides = [1, 1]} : vector<8x128xf32> to vector<1x128xf32>
    %c0_15 = arith.constant 0 : index
    %23 = memref.load %arg7[%c0_15] : memref<1xf32, #tpu.memory_space<smem>>
    %24 = vector.broadcast %23 : f32 to vector<1x128xf32>
    %25 = arith.addf %22, %24 : vector<1x128xf32>
    %cst_16 = arith.constant 0.000000e+00 : f32
    %26 = vector.broadcast %cst_16 : f32 to vector<1x128xf32>
    %27 = arith.subf %26, %25 : vector<1x128xf32>
    %28 = math.exp %27 : vector<1x128xf32>
    %cst_17 = arith.constant 1.000000e+00 : f32
    %29 = vector.broadcast %cst_17 : f32 to vector<1x128xf32>
    %30 = arith.addf %29, %28 : vector<1x128xf32>
    %cst_18 = arith.constant 1.000000e+00 : f32
    %31 = vector.broadcast %cst_18 : f32 to vector<1x128xf32>
    %32 = arith.divf %31, %30 : vector<1x128xf32>
    %c0_19 = arith.constant 0 : index
    %c0_20 = arith.constant 0 : index
    %c0_21 = arith.constant 0 : index
    %33 = vector.load %arg8[%c0_19, %c0_20, %c0_21] : memref<1x1x128xf32, #tpu.memory_space<vmem>>, vector<1x1x128xf32>
    %34 = vector.shape_cast %33 : vector<1x1x128xf32> to vector<1x128xf32>
    %35 = vector.shape_cast %32 : vector<1x128xf32> to vector<1x1x128xf32>
    tpu.vector_store %arg8[%c0_19, %c0_20, %c0_21], %35 {strides = array<i32>} : memref<1x1x128xf32, #tpu.memory_space<vmem>>, vector<1x1x128xf32>,
    return
  }
  func.func @transform_0(%arg0: i32) -> (i32, i32) {
    %c0_i32 = arith.constant 0 : i32
    %c0_i32_0 = arith.constant 0 : i32
    return %arg0, %c0_i32 : i32, i32
  }
  func.func @transform_1(%arg0: i32) -> (i32, i32) {
    %c0_i32 = arith.constant 0 : i32
    %c0_i32_0 = arith.constant 0 : i32
    %c0_i32_1 = arith.constant 0 : i32
    return %c0_i32, %c0_i32_0 : i32, i32
  }
  func.func @transform_2(%arg0: i32) -> (i32, i32) {
    %c0_i32 = arith.constant 0 : i32
    %c0_i32_0 = arith.constant 0 : i32
    %c0_i32_1 = arith.constant 0 : i32
    return %c0_i32, %c0_i32_0 : i32, i32
  }
  func.func @transform_3(%arg0: i32) -> (i32, i32) {
    %c0_i32 = arith.constant 0 : i32
    %c0_i32_0 = arith.constant 0 : i32
    %c0_i32_1 = arith.constant 0 : i32
    return %c0_i32, %c0_i32_0 : i32, i32
  }
  func.func @transform_4(%arg0: i32) -> (i32, i32) {
    %c0_i32 = arith.constant 0 : i32
    %c0_i32_0 = arith.constant 0 : i32
    %c0_i32_1 = arith.constant 0 : i32
    return %c0_i32, %c0_i32_0 : i32, i32
  }
  func.func @transform_5(%arg0: i32) -> (i32, i32) {
    %c0_i32 = arith.constant 0 : i32
    %c0_i32_0 = arith.constant 0 : i32
    %c0_i32_1 = arith.constant 0 : i32
    return %c0_i32, %c0_i32_0 : i32, i32
  }
  func.func @transform_6(%arg0: i32) -> i32 {
    %c0_i32 = arith.constant 0 : i32
    %c0_i32_0 = arith.constant 0 : i32
    return %c0_i32 : i32
  }
  func.func @transform_7(%arg0: i32) -> (i32, i32, i32) {
    %c0_i32 = arith.constant 0 : i32
    %c0_i32_0 = arith.constant 0 : i32
    %c0_i32_1 = arith.constant 0 : i32
    return %arg0, %c0_i32, %c0_i32_0 : i32, i32, i32
  }
}

</mosaic_0001>

<bundles_post_ra>
// kernel: tpu_custom_call.1
= control target key start
LH: loop header
LB: loop body
LE: loop exit
PB: predicated region body
PF: predicated region fallthrough
CT: control target
= control target key end

     0   :  { %13 = vsyncpa [#allocation4], 0  ;;  %s783_s0 = inlined_call_operand.hbm [shape: f32[128,128], index: 0, kind: input, shape index: {}]   ;;  %s784_s1 = inlined_call_operand.hbm [shape: bf16[128,128], index: 1, kind: input, shape index: {}]   ;;  %s785_s2 = inlined_call_operand.vmem [shape: f32[1,128], index: 2, kind: input, shape index: {}]   ;;  %s786_s3 = inlined_call_operand.hbm [shape: bf16[128,128], index: 3, kind: input, shape index: {}]   ;;  %s787_s4 = inlined_call_operand.vmem [shape: f32[1,128], index: 4, kind: input, shape index: {}]   ;;  %s788_s5 = inlined_call_operand.vmem [shape: bf16[8,128], index: 5, kind: input, shape index: {}]   ;;  %s789_s6 = inlined_call_operand.<no memory space> [shape: f32[1], index: 6, kind: input, shape index: {}]   ;;  %s790_s7 = inlined_call_operand.hbm [shape: f32[1,1,128], index: 7, kind: output, shape index: {}]  }
   0x1   :  { %14 = vsyncpa [#allocation7], 0  ;;  %s33_s26 = sshll.u32 %s784_s1, 4  ;;  %s34_s26 = int_to_ptr.hbm [resolvable:$true] %s33_s26 }
   0x2   :  { %15 = vsyncpa [#allocation5], 0  ;;  %s672_s27 = smov [#allocation6]   ;;  %s20_s8 = sshll.u32 %s783_s0, 4  ;;  %s21_s8 = int_to_ptr.hbm [resolvable:$true] %s20_s8 }
   0x3   :  { %s35_s28 = sshll.u32 %s672_s27, 4  ;;  %s673_s9 = smov 64   ;;  %s36_s28 = int_to_ptr.vmem [resolvable:$true] %s35_s28 }
   0x4   :  { %s674_s10 = smov 4   ;;  %s675_s11 = smov [#allocation3]  }
   0x5   :  { %41 = dma.hbm_to_vmem [thread:$0]  %s34_s26, 1024, %s36_s28, [#allocation7], %s673_s9, %s673_s9, %s674_s10  }
   0x6   :  { %s22_s12 = sshll.u32 %s675_s11, 4  ;;  %s676_s13 = smov 128   ;;  %s23_s12 = int_to_ptr.vmem [resolvable:$true] %s22_s12 }
   0x7   :  { %s677_s14 = smov 8   ;;  %s48_s16 = sshll.u32 %s786_s3, 4  ;;  %s49_s16 = int_to_ptr.hbm [resolvable:$true] %s48_s16 }
   0x8   :  { %28 = dma.hbm_to_vmem [thread:$0]  %s21_s8, 2048, %s23_s12, [#allocation4], %s676_s13, %s676_s13, %s677_s14  }
   0x9   :  { %s678_s17 = smov [#allocation8]  }
   0xa   :  { %s50_s18 = sshll.u32 %s678_s17, 4  ;;  %s51_s18 = int_to_ptr.vmem [resolvable:$true] %s50_s18 }
   0xb   :  { %56 = dma.hbm_to_vmem [thread:$0]  %s49_s16, 1024, %s51_s18, [#allocation7], %s673_s9, %s673_s9, %s674_s10  }
   0xc   :  { %666 = dma.done.wait [#allocation4], 2048  }
   0xd   :  { %667 = vsyncadd [#allocation4], 4294965248 }
   0xe   :  { %668 = dma.done.wait [#allocation7], 2048  }
   0xf   :  { %669 = vsyncadd [#allocation7], 4294965248  ;;  %v539_v0 = vld [vmem:[#allocation6 + $0x38] sm:$0xff]  ;;  %v538_v1 = vld [vmem:[#allocation6 + $0x30] sm:$0xff]  ;;  %s457_s25 = sshll.u32 %s790_s7, 4  ;;  %s458_s25 = int_to_ptr.hbm [resolvable:$true] %s457_s25 }
  0x10   :  { %167 = vmatpush.bf16.msra.mxu0 %v539_v0  ;;  %548 = vmatpush.bf16.msra.mxu3 %v539_v0  ;;  %v537_v2 = vld [vmem:[#allocation6 + $0x28] sm:$0xff]  ;;  %v536_v3 = vld [vmem:[#allocation6 + $0x20] sm:$0xff]  ;;  %v535_v4 = vld [vmem:[#allocation6 + $0x18] sm:$0xff] }
  0x11   :  { %v534_v5 = vld [vmem:[#allocation6 + $0x10] sm:$0xff]  ;;  %v533_v6 = vld [vmem:[#allocation6 + $0x8] sm:$0xff]  ;;  %v532_v7 = vld [vmem:[#allocation6] sm:$0xff] }
  0x12   :  { %v75_v8 = vld [vmem:[#allocation3] sm:$0xff]  ;;  %v76_v9 = vld [vmem:[#allocation3 + $0x8] sm:$0xff]  ;;  %v77_v11 = vld [vmem:[#allocation3 + $0x10] sm:$0xff] }
  0x13   :  { %v91_v10 = vpack.c.bf16 %v76_v9, %v75_v8  ;;  %v78_v12 = vld [vmem:[#allocation3 + $0x18] sm:$0xff]  ;;  %v79_v14 = vld [vmem:[#allocation3 + $0x20] sm:$0xff]  ;;  %v80_v15 = vld [vmem:[#allocation3 + $0x28] sm:$0xff] }
  0x14   :  { %168 = vmatpush.bf16.msra.mxu0 %v538_v1  ;;  %549 = vmatpush.bf16.msra.mxu3 %v538_v1  ;;  %v92_v13 = vpack.c.bf16 %v78_v12, %v77_v11  ;;  %v93_v16 = vpack.c.bf16 %v80_v15, %v79_v14  ;;  %v85_v17 = vld [vmem:[#allocation3 + $0x50] sm:$0xff]  ;;  %v86_v18 = vld [vmem:[#allocation3 + $0x58] sm:$0xff]  ;;  %v545_v22 = vld [vmem:[#allocation8 + $0x28] sm:$0xff] }
  0x15   :  { %v96_v19 = vpack.c.bf16 %v86_v18, %v85_v17  ;;  %v547_v20 = vld [vmem:[#allocation8 + $0x38] sm:$0xff]  ;;  %v546_v21 = vld [vmem:[#allocation8 + $0x30] sm:$0xff]  ;;  %v87_v25 = vld [vmem:[#allocation3 + $0x60] sm:$0xff] }
  0x16   :  { %324 = vmatpush.bf16.msra.mxu1 %v547_v20  ;;  %v81_v23 = vld [vmem:[#allocation3 + $0x30] sm:$0xff]  ;;  %v82_v24 = vld [vmem:[#allocation3 + $0x38] sm:$0xff]  ;;  %v88_v26 = vld [vmem:[#allocation3 + $0x68] sm:$0xff] }
  0x17   :  { %v544_v27 = vld [vmem:[#allocation8 + $0x20] sm:$0xff]  ;;  %v94_v28 = vpack.c.bf16 %v82_v24, %v81_v23  ;;  %v97_v29 = vpack.c.bf16 %v88_v26, %v87_v25  ;;  %v84_v31 = vld [vmem:[#allocation3 + $0x48] sm:$0xff]  ;;  %v89_v32 = vld [vmem:[#allocation3 + $0x70] sm:$0xff] }
  0x18   :  { %169 = vmatpush.bf16.msra.mxu0 %v537_v2  ;;  %550 = vmatpush.bf16.msra.mxu3 %v537_v2  ;;  %v83_v30 = vld [vmem:[#allocation3 + $0x40] sm:$0xff]  ;;  %v90_v33 = vld [vmem:[#allocation3 + $0x78] sm:$0xff]  ;;  %v542_v37 = vld [vmem:[#allocation8 + $0x10] sm:$0xff] }
  0x19   :  { %v95_v34 = vpack.c.bf16 %v84_v31, %v83_v30  ;;  %v98_v35 = vpack.c.bf16 %v90_v33, %v89_v32  ;;  %v543_v36 = vld [vmem:[#allocation8 + $0x18] sm:$0xff]  ;;  %v541_v38 = vld [vmem:[#allocation8 + $0x8] sm:$0xff]  ;;  %v540_v39 = vld [vmem:[#allocation8] sm:$0xff] }
  0x1a   :  { %325 = vmatpush.bf16.msra.mxu1 %v546_v21  ;;  %v732_v41 = vld [vmem:[%s785_s2] ss:$0 sm:$0xff] }
  0x1c   :  { %170 = vmatpush.bf16.msra.mxu0 %v536_v3  ;;  %551 = vmatpush.bf16.msra.mxu3 %v536_v3 }
  0x1e   :  { %326 = vmatpush.bf16.msra.mxu1 %v545_v22 }
  0x20   :  { %171 = vmatpush.bf16.msra.mxu0 %v535_v4  ;;  %552 = vmatpush.bf16.msra.mxu3 %v535_v4 }
  0x22   :  { %327 = vmatpush.bf16.msra.mxu1 %v544_v27 }
  0x24   :  { %172 = vmatpush.bf16.msra.mxu0 %v534_v5  ;;  %553 = vmatpush.bf16.msra.mxu3 %v534_v5 }
  0x26   :  { %328 = vmatpush.bf16.msra.mxu1 %v543_v36 }
  0x28   :  { %173 = vmatpush.bf16.msra.mxu0 %v533_v6  ;;  %554 = vmatpush.bf16.msra.mxu3 %v533_v6 }
  0x2a   :  { %329 = vmatpush.bf16.msra.mxu1 %v542_v37 }
  0x2c   :  { %174 = vmatpush.bf16.msra.mxu0 %v532_v7  ;;  %555 = vmatpush.bf16.msra.mxu3 %v532_v7 }
  0x2e   :  { %330 = vmatpush.bf16.msra.mxu1 %v541_v38 }
  0x2f   :  { %175 = vmatmul.bf16.vlgmr.msra.gmra.mxu0 %v91_v10  ;;  %200 = vmatmul.bf16.vlgmr.msra.gmra.mxu3 %v96_v19 }
  0x32   :  { %331 = vmatpush.bf16.msra.mxu1 %v540_v39 }
  0x3f   :  { %180 = vmatmul.bf16.gmra.mxu0 %v92_v13  ;;  %205 = vmatmul.bf16.gmra.mxu3 %v97_v29 }
  0x4f   :  { %185 = vmatmul.bf16.gmra.mxu0 %v93_v16  ;;  %210 = vmatmul.bf16.gmra.mxu3 %v98_v35 }
  0x5f   :  { %190 = vmatmul.bf16.gmra.mxu0 %v94_v28 }
  0x6f   :  { %195 = vmatmul.bf16.gmra.mxu0 %v95_v34 }
  0xac   :  { %v176_v40 = vpop.f32.mrf.mxu0 }
  0xad   :  { %v177_v42 = vadd.f32 %v732_v41, %v176_v40 }
  0xaf   :  { %v216_v44 = vmul.f32 0.2, %v177_v42 }
  0xb1   :  { %v232_v47 = vmax.f32 %v177_v42, %v216_v44 }
  0xb2   :  { %v201_v12 = vpop.f32.mrf.mxu3 }
  0xb3   :  { %v202_v25 = vadd.f32 %v732_v41, %v201_v12 }
  0xb4   :  { %v178_v43 = vpop.f32.mrf.mxu0 }
  0xb5   :  { %v179_v45 = vadd.f32 %v732_v41, %v178_v43  ;;  %v226_v27 = vmul.f32 0.2, %v202_v25 }
  0xb7   :  { %v217_v46 = vmul.f32 0.2, %v179_v45  ;;  %v242_v29 = vmax.f32 %v202_v25, %v226_v27 }
  0xb9   :  { %v233_v48 = vmax.f32 %v179_v45, %v217_v46 }
  0xba   :  { %v203_v17 = vpop.f32.mrf.mxu3 }
  0xbb   :  { %v248_v49 = vpack.c.bf16 %v233_v48, %v232_v47  ;;  %v204_v26 = vadd.f32 %v732_v41, %v203_v17 }
  0xbc   :  { %v181_v50 = vpop.f32.mrf.mxu0 }
  0xbd   :  { %332 = vmatmul.bf16.vlgmr.msra.gmra.mxu1 %v248_v49  ;;  %v182_v51 = vadd.f32 %v732_v41, %v181_v50  ;;  %v227_v28 = vmul.f32 0.2, %v204_v26 }
  0xbf   :  { %v218_v53 = vmul.f32 0.2, %v182_v51  ;;  %v243_v30 = vmax.f32 %v204_v26, %v227_v28 }
  0xc1   :  { %v234_v56 = vmax.f32 %v182_v51, %v218_v53  ;;  %v253_v32 = vpack.c.bf16 %v243_v30, %v242_v29  ;;  %v753_v51 = vld [vmem:[%s787_s4] ss:$0 sm:$0xff] }
  0xc2   :  { %v206_v24 = vpop.f32.mrf.mxu3 }
  0xc3   :  { %v207_v33 = vadd.f32 %v732_v41, %v206_v24 }
  0xc4   :  { %v183_v52 = vpop.f32.mrf.mxu0 }
  0xc5   :  { %v184_v54 = vadd.f32 %v732_v41, %v183_v52  ;;  %v228_v36 = vmul.f32 0.2, %v207_v33 }
  0xc7   :  { %v219_v55 = vmul.f32 0.2, %v184_v54  ;;  %v244_v38 = vmax.f32 %v207_v33, %v228_v36 }
  0xc9   :  { %v235_v57 = vmax.f32 %v184_v54, %v219_v55 }
  0xca   :  { %v208_v31 = vpop.f32.mrf.mxu3 }
  0xcb   :  { %v249_v58 = vpack.c.bf16 %v235_v57, %v234_v56  ;;  %v209_v34 = vadd.f32 %v732_v41, %v208_v31 }
  0xcc   :  { %v186_v59 = vpop.f32.mrf.mxu0 }
  0xcd   :  { %337 = vmatmul.bf16.gmra.mxu1 %v249_v58  ;;  %v187_v60 = vadd.f32 %v732_v41, %v186_v59  ;;  %v229_v37 = vmul.f32 0.2, %v209_v34 }
  0xcf   :  { %v220_v62 = vmul.f32 0.2, %v187_v60  ;;  %v245_v39 = vmax.f32 %v209_v34, %v229_v37 }
  0xd1   :  { %v236_v1 = vmax.f32 %v187_v60, %v220_v62  ;;  %v254_v40 = vpack.c.bf16 %v245_v39, %v244_v38 }
  0xd2   :  { %v211_v35 = vpop.f32.mrf.mxu3 }
  0xd3   :  { %v212_v43 = vadd.f32 %v732_v41, %v211_v35 }
  0xd4   :  { %v188_v61 = vpop.f32.mrf.mxu0 }
  0xd5   :  { %v189_v63 = vadd.f32 %v732_v41, %v188_v61  ;;  %v230_v45 = vmul.f32 0.2, %v212_v43 }
  0xd7   :  { %v221_v0 = vmul.f32 0.2, %v189_v63  ;;  %v246_v47 = vmax.f32 %v212_v43, %v230_v45 }
  0xd9   :  { %v237_v2 = vmax.f32 %v189_v63, %v221_v0 }
  0xda   :  { %v213_v42 = vpop.f32.mrf.mxu3 }
  0xdb   :  { %v250_v3 = vpack.c.bf16 %v237_v2, %v236_v1  ;;  %v214_v44 = vadd.f32 %v732_v41, %v213_v42 }
  0xdc   :  { %v191_v4 = vpop.f32.mrf.mxu0 }
  0xdd   :  { %342 = vmatmul.bf16.gmra.mxu1 %v250_v3  ;;  %v192_v5 = vadd.f32 %v732_v41, %v191_v4  ;;  %v231_v46 = vmul.f32 0.2, %v214_v44 }
  0xdf   :  { %v222_v7 = vmul.f32 0.2, %v192_v5  ;;  %v247_v48 = vmax.f32 %v214_v44, %v231_v46 }
  0xe1   :  { %v238_v10 = vmax.f32 %v192_v5, %v222_v7  ;;  %v255_v49 = vpack.c.bf16 %v247_v48, %v246_v47 }
  0xe4   :  { %v193_v6 = vpop.f32.mrf.mxu0 }
  0xe5   :  { %v194_v8 = vadd.f32 %v732_v41, %v193_v6 }
  0xe7   :  { %v223_v9 = vmul.f32 0.2, %v194_v8 }
  0xe9   :  { %v239_v11 = vmax.f32 %v194_v8, %v223_v9 }
  0xeb   :  { %v251_v13 = vpack.c.bf16 %v239_v11, %v238_v10 }
  0xec   :  { %v196_v14 = vpop.f32.mrf.mxu0 }
  0xed   :  { %347 = vmatmul.bf16.gmra.mxu1 %v251_v13  ;;  %v197_v15 = vadd.f32 %v732_v41, %v196_v14 }
  0xef   :  { %v224_v18 = vmul.f32 0.2, %v197_v15 }
  0xf1   :  { %v240_v21 = vmax.f32 %v197_v15, %v224_v18 }
  0xf4   :  { %v198_v16 = vpop.f32.mrf.mxu0 }
  0xf5   :  { %v199_v19 = vadd.f32 %v732_v41, %v198_v16 }
  0xf7   :  { %v225_v20 = vmul.f32 0.2, %v199_v19 }
  0xf9   :  { %v241_v22 = vmax.f32 %v199_v19, %v225_v20 }
  0xfb   :  { %v252_v23 = vpack.c.bf16 %v241_v22, %v240_v21 }
  0xfd   :  { %352 = vmatmul.bf16.gmra.mxu1 %v252_v23 }
 0x10d   :  { %357 = vmatmul.bf16.gmra.mxu1 %v253_v32 }
 0x11d   :  { %362 = vmatmul.bf16.gmra.mxu1 %v254_v40 }
 0x12d   :  { %367 = vmatmul.bf16.gmra.mxu1 %v255_v49 }
 0x13a   :  { %v333_v50 = vpop.f32.mrf.mxu1 }
 0x13b   :  { %v334_v52 = vadd.f32 %v753_v51, %v333_v50 }
 0x13d   :  { %v373_v54 = vmul.f32 0.2, %v334_v52 }
 0x13f   :  { %v389_v41 = vmax.f32 %v334_v52, %v373_v54 }
 0x142   :  { %v335_v53 = vpop.f32.mrf.mxu1 }
 0x143   :  { %v336_v55 = vadd.f32 %v753_v51, %v335_v53 }
 0x145   :  { %v374_v56 = vmul.f32 0.2, %v336_v55 }
 0x147   :  { %v390_v57 = vmax.f32 %v336_v55, %v374_v56 }
 0x149   :  { %v757_v58 = vpack.c.bf16 %v390_v57, %v389_v41 }
 0x14a   :  { %v338_v59 = vpop.f32.mrf.mxu1 }
 0x14b   :  { %v339_v60 = vadd.f32 %v753_v51, %v338_v59 }
 0x14d   :  { %v375_v62 = vmul.f32 0.2, %v339_v60 }
 0x14f   :  { %v391_v1 = vmax.f32 %v339_v60, %v375_v62  ;;  %v413_v60 = vld [vmem:[%s788_s5] sm:$0xf]  ;;  %s679_s5 = smov [#allocation9]  }
 0x150   :  { %s455_s23 = sshll.u32 %s679_s5, 4  ;;  %s456_s23 = int_to_ptr.vmem [resolvable:$true] %s455_s23 }
 0x152   :  { %v340_v61 = vpop.f32.mrf.mxu1 }
 0x153   :  { %v341_v63 = vadd.f32 %v753_v51, %v340_v61 }
 0x155   :  { %v376_v0 = vmul.f32 0.2, %v341_v63 }
 0x157   :  { %v392_v2 = vmax.f32 %v341_v63, %v376_v0 }
 0x159   :  { %v406_v3 = vpack.c.bf16 %v392_v2, %v391_v1 }
 0x15a   :  { %v343_v4 = vpop.f32.mrf.mxu1 }
 0x15b   :  { %v344_v5 = vadd.f32 %v753_v51, %v343_v4 }
 0x15d   :  { %v377_v7 = vmul.f32 0.2, %v344_v5 }
 0x15f   :  { %v393_v10 = vmax.f32 %v344_v5, %v377_v7 }
 0x162   :  { %v345_v6 = vpop.f32.mrf.mxu1 }
 0x163   :  { %v346_v8 = vadd.f32 %v753_v51, %v345_v6 }
 0x165   :  { %v378_v9 = vmul.f32 0.2, %v346_v8 }
 0x167   :  { %v394_v11 = vmax.f32 %v346_v8, %v378_v9 }
 0x169   :  { %v407_v12 = vpack.c.bf16 %v394_v11, %v393_v10 }
 0x16a   :  { %v348_v13 = vpop.f32.mrf.mxu1 }
 0x16b   :  { %v349_v14 = vadd.f32 %v753_v51, %v348_v13 }
 0x16d   :  { %v379_v16 = vmul.f32 0.2, %v349_v14 }
 0x16f   :  { %v395_v19 = vmax.f32 %v349_v14, %v379_v16 }
 0x172   :  { %v350_v15 = vpop.f32.mrf.mxu1 }
 0x173   :  { %v351_v17 = vadd.f32 %v753_v51, %v350_v15 }
 0x175   :  { %v380_v18 = vmul.f32 0.2, %v351_v17 }
 0x177   :  { %v396_v20 = vmax.f32 %v351_v17, %v380_v18 }
 0x179   :  { %v408_v21 = vpack.c.bf16 %v396_v20, %v395_v19 }
 0x17a   :  { %v353_v22 = vpop.f32.mrf.mxu1 }
 0x17b   :  { %v354_v23 = vadd.f32 %v753_v51, %v353_v22 }
 0x17d   :  { %v381_v25 = vmul.f32 0.2, %v354_v23 }
 0x17f   :  { %v397_v28 = vmax.f32 %v354_v23, %v381_v25 }
 0x182   :  { %v355_v24 = vpop.f32.mrf.mxu1 }
 0x183   :  { %v356_v26 = vadd.f32 %v753_v51, %v355_v24 }
 0x185   :  { %v382_v27 = vmul.f32 0.2, %v356_v26 }
 0x187   :  { %v398_v29 = vmax.f32 %v356_v26, %v382_v27 }
 0x189   :  { %v409_v30 = vpack.c.bf16 %v398_v29, %v397_v28 }
 0x18a   :  { %v358_v31 = vpop.f32.mrf.mxu1 }
 0x18b   :  { %v359_v52 = vadd.f32 %v753_v51, %v358_v31 }
 0x18d   :  { %v383_v56 = vmul.f32 0.2, %v359_v52 }
 0x18f   :  { %v399_v57 = vmax.f32 %v359_v52, %v383_v56 }
 0x192   :  { %v360_v32 = vpop.f32.mrf.mxu1 }
 0x193   :  { %v361_v49 = vadd.f32 %v753_v51, %v360_v32 }
 0x195   :  { %v384_v54 = vmul.f32 0.2, %v361_v49 }
 0x197   :  { %v400_v41 = vmax.f32 %v361_v49, %v384_v54 }
 0x199   :  { %v410_v59 = vpack.c.bf16 %v400_v41, %v399_v57 }
 0x19a   :  { %v363_v33 = vpop.f32.mrf.mxu1 }
 0x19b   :  { %v364_v43 = vadd.f32 %v753_v51, %v363_v33 }
 0x19d   :  { %v385_v48 = vmul.f32 0.2, %v364_v43 }
 0x19f   :  { %v401_v53 = vmax.f32 %v364_v43, %v385_v48 }
 0x1a2   :  { %v365_v34 = vpop.f32.mrf.mxu1 }
 0x1a3   :  { %v366_v40 = vadd.f32 %v753_v51, %v365_v34 }
 0x1a5   :  { %v386_v46 = vmul.f32 0.2, %v366_v40 }
 0x1a7   :  { %v402_v50 = vmax.f32 %v366_v40, %v386_v46 }
 0x1a9   :  { %v411_v55 = vpack.c.bf16 %v402_v50, %v401_v53 }
 0x1aa   :  { %v368_v35 = vpop.f32.mrf.mxu1 }
 0x1ab   :  { %v369_v36 = vadd.f32 %v753_v51, %v368_v35 }
 0x1ad   :  { %v387_v38 = vmul.f32 0.2, %v369_v36 }
 0x1af   :  { %v403_v44 = vmax.f32 %v369_v36, %v387_v38 }
 0x1b2   :  { %v370_v37 = vpop.f32.mrf.mxu1 }
 0x1b3   :  { %v371_v39 = vadd.f32 %v753_v51, %v370_v37  ;;  %v428_v51 = vstv %s789_s6 }
 0x1b5   :  { %v388_v42 = vmul.f32 0.2, %v371_v39 }
 0x1b7   :  { %v404_v45 = vmax.f32 %v371_v39, %v388_v42 }
 0x1b9   :  { %v412_v47 = vpack.c.bf16 %v404_v45, %v403_v44 }
 0x1bb   :  { %414 = vmatpush.bf16.xpose.msra.mxu2 %v412_v47 }
 0x1c3   :  { %415 = vmatpush.bf16.xpose.msra.mxu2 %v411_v55 }
 0x1cb   :  { %416 = vmatpush.bf16.xpose.msra.mxu2 %v410_v59 }
 0x1d3   :  { %417 = vmatpush.bf16.xpose.msra.mxu2 %v409_v30 }
 0x1db   :  { %418 = vmatpush.bf16.xpose.msra.mxu2 %v408_v21 }
 0x1e3   :  { %419 = vmatpush.bf16.xpose.msra.mxu2 %v407_v12 }
 0x1eb   :  { %420 = vmatpush.bf16.xpose.msra.mxu2 %v406_v3 }
 0x1f3   :  { %421 = vmatpush.bf16.xpose.msra.mxu2 %v757_v58 }
 0x1fa   :  { %422 = vmatmul.bf16.vlgmr.msra.gmra.mxu2 %v413_v60 }
 0x27d   :  { %v423_v61 = vpop.f32.mrf.mxu2 }
 0x27e   :  { %v429_v62 = vadd.f32 %v428_v51, %v423_v61 }
 0x280   :  { %v430_v63 = vsub.f32 0.0, %v429_v62 }
 0x282   :  { %v431_v0 = vmul.f32 1.442695, %v430_v63 }
 0x284   :  { %566 = vpow2.f32 %v431_v0 }
 0x285   :  { %v425_v1 = vpop.f32.mrf.mxu2 }
 0x28a   :  { %v567_v2 = vpop.eup %566 }
 0x28b   :  { %v433_v4 = vadd.f32 1.0, %v567_v2 }
 0x28d   :  { %568 = vrcp.f32 %v433_v4  ;;  %v445_v6 = vand.u32 2147483648, %v433_v4  ;;  %v443_v8 = vand.u32 2147483647, %v433_v4  ;;  %vm439_vm1 = vweird.f32 %v433_v4 }
 0x28f   :  { %v446_v10 = vor.u32 1.1754944e-38, %v445_v6  ;;  %vm444_vm3 = vcmp.eq.f32.partialorder %v443_v8, 8.507059e+37 }
 0x293   :  { %v569_v3 = vpop.eup %568 }
 0x294   :  { %v435_v58 = vmul.f32 %v569_v3, %v433_v4  ;;  %vm440_vm0 = vweird.f32 %v569_v3 }
 0x295   :  { %vm441_vm2 = vmor %vm439_vm1, %vm440_vm0 }
 0x296   :  { %v436_v5 = vsub.f32 1.0, %v435_v58 }
 0x298   :  { %v437_v7 = vmul.f32 %v569_v3, %v436_v5 }
 0x29a   :  { %v438_v9 = vadd.f32 %v569_v3, %v437_v7 }
 0x29c   :  { %v442_v11 = vsel %vm441_vm2, %v569_v3, %v438_v9 }
 0x29d   :  { %v447_v12 = vsel %vm444_vm3, %v446_v10, %v442_v11 }
 0x29e   :  { %449 = vst [vmem:[#allocation9] sm:$0x1] %v447_v12 }
 0x29f   :  { %460 = dma.vmem_to_hbm [thread:$0]  %s456_s23, 16, %s458_s25, [#allocation5]  }
 0x2a0   :  { %670 = dma.done.wait [#allocation5], 16  }
 0x2a1   :  { %671 = vsyncadd [#allocation5], 4294967280 }
 0x2a2   :  { %465 = vsyncpa [#allocation4], 1 }
 0x2a3   :  { %466 = vsyncpa [#allocation7], 1 }
 0x2a4   :  { %467 = vsyncpa [#allocation5], 1 }

// kernel: tpu_custom_call.1
= control target key start
LH: loop header
LB: loop body
LE: loop exit
PB: predicated region body
PF: predicated region fallthrough
CT: control target
= control target key end

     0   :  { %13 = vsyncpa [#allocation4], 0  ;;  %s783_s0 = inlined_call_operand.hbm [shape: f32[128,128], index: 0, kind: input, shape index: {}]   ;;  %s784_s1 = inlined_call_operand.hbm [shape: bf16[128,128], index: 1, kind: input, shape index: {}]   ;;  %s785_s2 = inlined_call_operand.vmem [shape: f32[1,128], index: 2, kind: input, shape index: {}]   ;;  %s786_s3 = inlined_call_operand.hbm [shape: bf16[128,128], index: 3, kind: input, shape index: {}]   ;;  %s787_s4 = inlined_call_operand.vmem [shape: f32[1,128], index: 4, kind: input, shape index: {}]   ;;  %s788_s5 = inlined_call_operand.vmem [shape: bf16[8,128], index: 5, kind: input, shape index: {}]   ;;  %s789_s6 = inlined_call_operand.<no memory space> [shape: f32[1], index: 6, kind: input, shape index: {}]   ;;  %s790_s7 = inlined_call_operand.hbm [shape: f32[1,1,128], index: 7, kind: output, shape index: {}]  }
   0x1   :  { %14 = vsyncpa [#allocation7], 0  ;;  %s33_s26 = sshll.u32 %s784_s1, 4  ;;  %s34_s26 = int_to_ptr.hbm [resolvable:$true] %s33_s26 }
   0x2   :  { %15 = vsyncpa [#allocation5], 0  ;;  %s672_s27 = smov [#allocation6]   ;;  %s20_s8 = sshll.u32 %s783_s0, 4  ;;  %s21_s8 = int_to_ptr.hbm [resolvable:$true] %s20_s8 }
   0x3   :  { %s35_s28 = sshll.u32 %s672_s27, 4  ;;  %s673_s9 = smov 64   ;;  %s36_s28 = int_to_ptr.vmem [resolvable:$true] %s35_s28 }
   0x4   :  { %s674_s10 = smov 4   ;;  %s675_s11 = smov [#allocation3]  }
   0x5   :  { %41 = dma.hbm_to_vmem [thread:$0]  %s34_s26, 1024, %s36_s28, [#allocation7], %s673_s9, %s673_s9, %s674_s10  }
   0x6   :  { %s22_s12 = sshll.u32 %s675_s11, 4  ;;  %s676_s13 = smov 128   ;;  %s23_s12 = int_to_ptr.vmem [resolvable:$true] %s22_s12 }
   0x7   :  { %s677_s14 = smov 8   ;;  %s48_s16 = sshll.u32 %s786_s3, 4  ;;  %s49_s16 = int_to_ptr.hbm [resolvable:$true] %s48_s16 }
   0x8   :  { %28 = dma.hbm_to_vmem [thread:$0]  %s21_s8, 2048, %s23_s12, [#allocation4], %s676_s13, %s676_s13, %s677_s14  }
   0x9   :  { %s678_s17 = smov [#allocation8]  }
   0xa   :  { %s50_s18 = sshll.u32 %s678_s17, 4  ;;  %s51_s18 = int_to_ptr.vmem [resolvable:$true] %s50_s18 }
   0xb   :  { %56 = dma.hbm_to_vmem [thread:$0]  %s49_s16, 1024, %s51_s18, [#allocation7], %s673_s9, %s673_s9, %s674_s10  }
   0xc   :  { %666 = dma.done.wait [#allocation4], 2048  }
   0xd   :  { %667 = vsyncadd [#allocation4], 4294965248 }
   0xe   :  { %668 = dma.done.wait [#allocation7], 2048  }
   0xf   :  { %669 = vsyncadd [#allocation7], 4294965248  ;;  %v539_v0 = vld [vmem:[#allocation6 + $0x38] sm:$0xff]  ;;  %v538_v1 = vld [vmem:[#allocation6 + $0x30] sm:$0xff]  ;;  %s457_s25 = sshll.u32 %s790_s7, 4  ;;  %s458_s25 = int_to_ptr.hbm [resolvable:$true] %s457_s25 }
  0x10   :  { %167 = vmatpush.bf16.msra.mxu0 %v539_v0  ;;  %548 = vmatpush.bf16.msra.mxu3 %v539_v0  ;;  %v537_v2 = vld [vmem:[#allocation6 + $0x28] sm:$0xff]  ;;  %v536_v3 = vld [vmem:[#allocation6 + $0x20] sm:$0xff]  ;;  %v535_v4 = vld [vmem:[#allocation6 + $0x18] sm:$0xff] }
  0x11   :  { %v534_v5 = vld [vmem:[#allocation6 + $0x10] sm:$0xff]  ;;  %v533_v6 = vld [vmem:[#allocation6 + $0x8] sm:$0xff]  ;;  %v532_v7 = vld [vmem:[#allocation6] sm:$0xff] }
  0x12   :  { %v75_v8 = vld [vmem:[#allocation3] sm:$0xff]  ;;  %v76_v9 = vld [vmem:[#allocation3 + $0x8] sm:$0xff]  ;;  %v77_v11 = vld [vmem:[#allocation3 + $0x10] sm:$0xff] }
  0x13   :  { %v91_v10 = vpack.c.bf16 %v76_v9, %v75_v8  ;;  %v78_v12 = vld [vmem:[#allocation3 + $0x18] sm:$0xff]  ;;  %v79_v14 = vld [vmem:[#allocation3 + $0x20] sm:$0xff]  ;;  %v80_v15 = vld [vmem:[#allocation3 + $0x28] sm:$0xff] }
  0x14   :  { %168 = vmatpush.bf16.msra.mxu0 %v538_v1  ;;  %549 = vmatpush.bf16.msra.mxu3 %v538_v1  ;;  %v92_v13 = vpack.c.bf16 %v78_v12, %v77_v11  ;;  %v93_v16 = vpack.c.bf16 %v80_v15, %v79_v14  ;;  %v85_v17 = vld [vmem:[#allocation3 + $0x50] sm:$0xff]  ;;  %v86_v18 = vld [vmem:[#allocation3 + $0x58] sm:$0xff]  ;;  %v545_v22 = vld [vmem:[#allocation8 + $0x28] sm:$0xff] }
  0x15   :  { %v96_v19 = vpack.c.bf16 %v86_v18, %v85_v17  ;;  %v547_v20 = vld [vmem:[#allocation8 + $0x38] sm:$0xff]  ;;  %v546_v21 = vld [vmem:[#allocation8 + $0x30] sm:$0xff]  ;;  %v87_v25 = vld [vmem:[#allocation3 + $0x60] sm:$0xff] }
  0x16   :  { %324 = vmatpush.bf16.msra.mxu1 %v547_v20  ;;  %v81_v23 = vld [vmem:[#allocation3 + $0x30] sm:$0xff]  ;;  %v82_v24 = vld [vmem:[#allocation3 + $0x38] sm:$0xff]  ;;  %v88_v26 = vld [vmem:[#allocation3 + $0x68] sm:$0xff] }
  0x17   :  { %v544_v27 = vld [vmem:[#allocation8 + $0x20] sm:$0xff]  ;;  %v94_v28 = vpack.c.bf16 %v82_v24, %v81_v23  ;;  %v97_v29 = vpack.c.bf16 %v88_v26, %v87_v25  ;;  %v84_v31 = vld [vmem:[#allocation3 + $0x48] sm:$0xff]  ;;  %v89_v32 = vld [vmem:[#allocation3 + $0x70] sm:$0xff] }
  0x18   :  { %169 = vmatpush.bf16.msra.mxu0 %v537_v2  ;;  %550 = vmatpush.bf16.msra.mxu3 %v537_v2  ;;  %v83_v30 = vld [vmem:[#allocation3 + $0x40] sm:$0xff]  ;;  %v90_v33 = vld [vmem:[#allocation3 + $0x78] sm:$0xff]  ;;  %v542_v37 = vld [vmem:[#allocation8 + $0x10] sm:$0xff] }
  0x19   :  { %v95_v34 = vpack.c.bf16 %v84_v31, %v83_v30  ;;  %v98_v35 = vpack.c.bf16 %v90_v33, %v89_v32  ;;  %v543_v36 = vld [vmem:[#allocation8 + $0x18] sm:$0xff]  ;;  %v541_v38 = vld [vmem:[#allocation8 + $0x8] sm:$0xff]  ;;  %v540_v39 = vld [vmem:[#allocation8] sm:$0xff] }
  0x1a   :  { %325 = vmatpush.bf16.msra.mxu1 %v546_v21  ;;  %v732_v41 = vld [vmem:[%s785_s2] ss:$0 sm:$0xff] }
  0x1c   :  { %170 = vmatpush.bf16.msra.mxu0 %v536_v3  ;;  %551 = vmatpush.bf16.msra.mxu3 %v536_v3 }
  0x1e   :  { %326 = vmatpush.bf16.msra.mxu1 %v545_v22 }
  0x20   :  { %171 = vmatpush.bf16.msra.mxu0 %v535_v4  ;;  %552 = vmatpush.bf16.msra.mxu3 %v535_v4 }
  0x22   :  { %327 = vmatpush.bf16.msra.mxu1 %v544_v27 }
  0x24   :  { %172 = vmatpush.bf16.msra.mxu0 %v534_v5  ;;  %553 = vmatpush.bf16.msra.mxu3 %v534_v5 }
  0x26   :  { %328 = vmatpush.bf16.msra.mxu1 %v543_v36 }
  0x28   :  { %173 = vmatpush.bf16.msra.mxu0 %v533_v6  ;;  %554 = vmatpush.bf16.msra.mxu3 %v533_v6 }
  0x2a   :  { %329 = vmatpush.bf16.msra.mxu1 %v542_v37 }
  0x2c   :  { %174 = vmatpush.bf16.msra.mxu0 %v532_v7  ;;  %555 = vmatpush.bf16.msra.mxu3 %v532_v7 }
  0x2e   :  { %330 = vmatpush.bf16.msra.mxu1 %v541_v38 }
  0x2f   :  { %175 = vmatmul.bf16.vlgmr.msra.gmra.mxu0 %v91_v10  ;;  %200 = vmatmul.bf16.vlgmr.msra.gmra.mxu3 %v96_v19 }
  0x32   :  { %331 = vmatpush.bf16.msra.mxu1 %v540_v39 }
  0x3f   :  { %180 = vmatmul.bf16.gmra.mxu0 %v92_v13  ;;  %205 = vmatmul.bf16.gmra.mxu3 %v97_v29 }
  0x4f   :  { %185 = vmatmul.bf16.gmra.mxu0 %v93_v16  ;;  %210 = vmatmul.bf16.gmra.mxu3 %v98_v35 }
  0x5f   :  { %190 = vmatmul.bf16.gmra.mxu0 %v94_v28 }
  0x6f   :  { %195 = vmatmul.bf16.gmra.mxu0 %v95_v34 }
  0xac   :  { %v176_v40 = vpop.f32.mrf.mxu0 }
  0xad   :  { %v177_v42 = vadd.f32 %v732_v41, %v176_v40 }
  0xaf   :  { %v216_v44 = vmul.f32 0.2, %v177_v42 }
  0xb1   :  { %v232_v47 = vmax.f32 %v177_v42, %v216_v44 }
  0xb2   :  { %v201_v12 = vpop.f32.mrf.mxu3 }
  0xb3   :  { %v202_v25 = vadd.f32 %v732_v41, %v201_v12 }
  0xb4   :  { %v178_v43 = vpop.f32.mrf.mxu0 }
  0xb5   :  { %v179_v45 = vadd.f32 %v732_v41, %v178_v43  ;;  %v226_v27 = vmul.f32 0.2, %v202_v25 }
  0xb7   :  { %v217_v46 = vmul.f32 0.2, %v179_v45  ;;  %v242_v29 = vmax.f32 %v202_v25, %v226_v27 }
  0xb9   :  { %v233_v48 = vmax.f32 %v179_v45, %v217_v46 }
  0xba   :  { %v203_v17 = vpop.f32.mrf.mxu3 }
  0xbb   :  { %v248_v49 = vpack.c.bf16 %v233_v48, %v232_v47  ;;  %v204_v26 = vadd.f32 %v732_v41, %v203_v17 }
  0xbc   :  { %v181_v50 = vpop.f32.mrf.mxu0 }
  0xbd   :  { %332 = vmatmul.bf16.vlgmr.msra.gmra.mxu1 %v248_v49  ;;  %v182_v51 = vadd.f32 %v732_v41, %v181_v50  ;;  %v227_v28 = vmul.f32 0.2, %v204_v26 }
  0xbf   :  { %v218_v53 = vmul.f32 0.2, %v182_v51  ;;  %v243_v30 = vmax.f32 %v204_v26, %v227_v28 }
  0xc1   :  { %v234_v56 = vmax.f32 %v182_v51, %v218_v53  ;;  %v253_v32 = vpack.c.bf16 %v243_v30, %v242_v29  ;;  %v753_v51 = vld [vmem:[%s787_s4] ss:$0 sm:$0xff] }
  0xc2   :  { %v206_v24 = vpop.f32.mrf.mxu3 }
  0xc3   :  { %v207_v33 = vadd.f32 %v732_v41, %v206_v24 }
  0xc4   :  { %v183_v52 = vpop.f32.mrf.mxu0 }
  0xc5   :  { %v184_v54 = vadd.f32 %v732_v41, %v183_v52  ;;  %v228_v36 = vmul.f32 0.2, %v207_v33 }
  0xc7   :  { %v219_v55 = vmul.f32 0.2, %v184_v54  ;;  %v244_v38 = vmax.f32 %v207_v33, %v228_v36 }
  0xc9   :  { %v235_v57 = vmax.f32 %v184_v54, %v219_v55 }
  0xca   :  { %v208_v31 = vpop.f32.mrf.mxu3 }
  0xcb   :  { %v249_v58 = vpack.c.bf16 %v235_v57, %v234_v56  ;;  %v209_v34 = vadd.f32 %v732_v41, %v208_v31 }
  0xcc   :  { %v186_v59 = vpop.f32.mrf.mxu0 }
  0xcd   :  { %337 = vmatmul.bf16.gmra.mxu1 %v249_v58  ;;  %v187_v60 = vadd.f32 %v732_v41, %v186_v59  ;;  %v229_v37 = vmul.f32 0.2, %v209_v34 }
  0xcf   :  { %v220_v62 = vmul.f32 0.2, %v187_v60  ;;  %v245_v39 = vmax.f32 %v209_v34, %v229_v37 }
  0xd1   :  { %v236_v1 = vmax.f32 %v187_v60, %v220_v62  ;;  %v254_v40 = vpack.c.bf16 %v245_v39, %v244_v38 }
  0xd2   :  { %v211_v35 = vpop.f32.mrf.mxu3 }
  0xd3   :  { %v212_v43 = vadd.f32 %v732_v41, %v211_v35 }
  0xd4   :  { %v188_v61 = vpop.f32.mrf.mxu0 }
  0xd5   :  { %v189_v63 = vadd.f32 %v732_v41, %v188_v61  ;;  %v230_v45 = vmul.f32 0.2, %v212_v43 }
  0xd7   :  { %v221_v0 = vmul.f32 0.2, %v189_v63  ;;  %v246_v47 = vmax.f32 %v212_v43, %v230_v45 }
  0xd9   :  { %v237_v2 = vmax.f32 %v189_v63, %v221_v0 }
  0xda   :  { %v213_v42 = vpop.f32.mrf.mxu3 }
  0xdb   :  { %v250_v3 = vpack.c.bf16 %v237_v2, %v236_v1  ;;  %v214_v44 = vadd.f32 %v732_v41, %v213_v42 }
  0xdc   :  { %v191_v4 = vpop.f32.mrf.mxu0 }
  0xdd   :  { %342 = vmatmul.bf16.gmra.mxu1 %v250_v3  ;;  %v192_v5 = vadd.f32 %v732_v41, %v191_v4  ;;  %v231_v46 = vmul.f32 0.2, %v214_v44 }
  0xdf   :  { %v222_v7 = vmul.f32 0.2, %v192_v5  ;;  %v247_v48 = vmax.f32 %v214_v44, %v231_v46 }
  0xe1   :  { %v238_v10 = vmax.f32 %v192_v5, %v222_v7  ;;  %v255_v49 = vpack.c.bf16 %v247_v48, %v246_v47 }
  0xe4   :  { %v193_v6 = vpop.f32.mrf.mxu0 }
  0xe5   :  { %v194_v8 = vadd.f32 %v732_v41, %v193_v6 }
  0xe7   :  { %v223_v9 = vmul.f32 0.2, %v194_v8 }
  0xe9   :  { %v239_v11 = vmax.f32 %v194_v8, %v223_v9 }
  0xeb   :  { %v251_v13 = vpack.c.bf16 %v239_v11, %v238_v10 }
  0xec   :  { %v196_v14 = vpop.f32.mrf.mxu0 }
  0xed   :  { %347 = vmatmul.bf16.gmra.mxu1 %v251_v13  ;;  %v197_v15 = vadd.f32 %v732_v41, %v196_v14 }
  0xef   :  { %v224_v18 = vmul.f32 0.2, %v197_v15 }
  0xf1   :  { %v240_v21 = vmax.f32 %v197_v15, %v224_v18 }
  0xf4   :  { %v198_v16 = vpop.f32.mrf.mxu0 }
  0xf5   :  { %v199_v19 = vadd.f32 %v732_v41, %v198_v16 }
  0xf7   :  { %v225_v20 = vmul.f32 0.2, %v199_v19 }
  0xf9   :  { %v241_v22 = vmax.f32 %v199_v19, %v225_v20 }
  0xfb   :  { %v252_v23 = vpack.c.bf16 %v241_v22, %v240_v21 }
  0xfd   :  { %352 = vmatmul.bf16.gmra.mxu1 %v252_v23 }
 0x10d   :  { %357 = vmatmul.bf16.gmra.mxu1 %v253_v32 }
 0x11d   :  { %362 = vmatmul.bf16.gmra.mxu1 %v254_v40 }
 0x12d   :  { %367 = vmatmul.bf16.gmra.mxu1 %v255_v49 }
 0x13a   :  { %v333_v50 = vpop.f32.mrf.mxu1 }
 0x13b   :  { %v334_v52 = vadd.f32 %v753_v51, %v333_v50 }
 0x13d   :  { %v373_v54 = vmul.f32 0.2, %v334_v52 }
 0x13f   :  { %v389_v41 = vmax.f32 %v334_v52, %v373_v54 }
 0x142   :  { %v335_v53 = vpop.f32.mrf.mxu1 }
 0x143   :  { %v336_v55 = vadd.f32 %v753_v51, %v335_v53 }
 0x145   :  { %v374_v56 = vmul.f32 0.2, %v336_v55 }
 0x147   :  { %v390_v57 = vmax.f32 %v336_v55, %v374_v56 }
 0x149   :  { %v757_v58 = vpack.c.bf16 %v390_v57, %v389_v41 }
 0x14a   :  { %v338_v59 = vpop.f32.mrf.mxu1 }
 0x14b   :  { %v339_v60 = vadd.f32 %v753_v51, %v338_v59 }
 0x14d   :  { %v375_v62 = vmul.f32 0.2, %v339_v60 }
 0x14f   :  { %v391_v1 = vmax.f32 %v339_v60, %v375_v62  ;;  %v413_v60 = vld [vmem:[%s788_s5] sm:$0xf]  ;;  %s679_s5 = smov [#allocation9]  }
 0x150   :  { %s455_s23 = sshll.u32 %s679_s5, 4  ;;  %s456_s23 = int_to_ptr.vmem [resolvable:$true] %s455_s23 }
 0x152   :  { %v340_v61 = vpop.f32.mrf.mxu1 }
 0x153   :  { %v341_v63 = vadd.f32 %v753_v51, %v340_v61 }
 0x155   :  { %v376_v0 = vmul.f32 0.2, %v341_v63 }
 0x157   :  { %v392_v2 = vmax.f32 %v341_v63, %v376_v0 }
 0x159   :  { %v406_v3 = vpack.c.bf16 %v392_v2, %v391_v1 }
 0x15a   :  { %v343_v4 = vpop.f32.mrf.mxu1 }
 0x15b   :  { %v344_v5 = vadd.f32 %v753_v51, %v343_v4 }
 0x15d   :  { %v377_v7 = vmul.f32 0.2, %v344_v5 }
 0x15f   :  { %v393_v10 = vmax.f32 %v344_v5, %v377_v7 }
 0x162   :  { %v345_v6 = vpop.f32.mrf.mxu1 }
 0x163   :  { %v346_v8 = vadd.f32 %v753_v51, %v345_v6 }
 0x165   :  { %v378_v9 = vmul.f32 0.2, %v346_v8 }
 0x167   :  { %v394_v11 = vmax.f32 %v346_v8, %v378_v9 }
 0x169   :  { %v407_v12 = vpack.c.bf16 %v394_v11, %v393_v10 }
 0x16a   :  { %v348_v13 = vpop.f32.mrf.mxu1 }
 0x16b   :  { %v349_v14 = vadd.f32 %v753_v51, %v348_v13 }
 0x16d   :  { %v379_v16 = vmul.f32 0.2, %v349_v14 }
 0x16f   :  { %v395_v19 = vmax.f32 %v349_v14, %v379_v16 }
 0x172   :  { %v350_v15 = vpop.f32.mrf.mxu1 }
 0x173   :  { %v351_v17 = vadd.f32 %v753_v51, %v350_v15 }
 0x175   :  { %v380_v18 = vmul.f32 0.2, %v351_v17 }
 0x177   :  { %v396_v20 = vmax.f32 %v351_v17, %v380_v18 }
 0x179   :  { %v408_v21 = vpack.c.bf16 %v396_v20, %v395_v19 }
 0x17a   :  { %v353_v22 = vpop.f32.mrf.mxu1 }
 0x17b   :  { %v354_v23 = vadd.f32 %v753_v51, %v353_v22 }
 0x17d   :  { %v381_v25 = vmul.f32 0.2, %v354_v23 }
 0x17f   :  { %v397_v28 = vmax.f32 %v354_v23, %v381_v25 }
 0x182   :  { %v355_v24 = vpop.f32.mrf.mxu1 }
 0x183   :  { %v356_v26 = vadd.f32 %v753_v51, %v355_v24 }
 0x185   :  { %v382_v27 = vmul.f32 0.2, %v356_v26 }
 0x187   :  { %v398_v29 = vmax.f32 %v356_v26, %v382_v27 }
 0x189   :  { %v409_v30 = vpack.c.bf16 %v398_v29, %v397_v28 }
 0x18a   :  { %v358_v31 = vpop.f32.mrf.mxu1 }
 0x18b   :  { %v359_v52 = vadd.f32 %v753_v51, %v358_v31 }
 0x18d   :  { %v383_v56 = vmul.f32 0.2, %v359_v52 }
 0x18f   :  { %v399_v57 = vmax.f32 %v359_v52, %v383_v56 }
 0x192   :  { %v360_v32 = vpop.f32.mrf.mxu1 }
 0x193   :  { %v361_v49 = vadd.f32 %v753_v51, %v360_v32 }
 0x195   :  { %v384_v54 = vmul.f32 0.2, %v361_v49 }
 0x197   :  { %v400_v41 = vmax.f32 %v361_v49, %v384_v54 }
 0x199   :  { %v410_v59 = vpack.c.bf16 %v400_v41, %v399_v57 }
 0x19a   :  { %v363_v33 = vpop.f32.mrf.mxu1 }
 0x19b   :  { %v364_v43 = vadd.f32 %v753_v51, %v363_v33 }
 0x19d   :  { %v385_v48 = vmul.f32 0.2, %v364_v43 }
 0x19f   :  { %v401_v53 = vmax.f32 %v364_v43, %v385_v48 }
 0x1a2   :  { %v365_v34 = vpop.f32.mrf.mxu1 }
 0x1a3   :  { %v366_v40 = vadd.f32 %v753_v51, %v365_v34 }
 0x1a5   :  { %v386_v46 = vmul.f32 0.2, %v366_v40 }
 0x1a7   :  { %v402_v50 = vmax.f32 %v366_v40, %v386_v46 }
 0x1a9   :  { %v411_v55 = vpack.c.bf16 %v402_v50, %v401_v53 }
 0x1aa   :  { %v368_v35 = vpop.f32.mrf.mxu1 }
 0x1ab   :  { %v369_v36 = vadd.f32 %v753_v51, %v368_v35 }
 0x1ad   :  { %v387_v38 = vmul.f32 0.2, %v369_v36 }
 0x1af   :  { %v403_v44 = vmax.f32 %v369_v36, %v387_v38 }
 0x1b2   :  { %v370_v37 = vpop.f32.mrf.mxu1 }
 0x1b3   :  { %v371_v39 = vadd.f32 %v753_v51, %v370_v37  ;;  %v428_v51 = vstv %s789_s6 }
 0x1b5   :  { %v388_v42 = vmul.f32 0.2, %v371_v39 }
 0x1b7   :  { %v404_v45 = vmax.f32 %v371_v39, %v388_v42 }
 0x1b9   :  { %v412_v47 = vpack.c.bf16 %v404_v45, %v403_v44 }
 0x1bb   :  { %414 = vmatpush.bf16.xpose.msra.mxu2 %v412_v47 }
 0x1c3   :  { %415 = vmatpush.bf16.xpose.msra.mxu2 %v411_v55 }
 0x1cb   :  { %416 = vmatpush.bf16.xpose.msra.mxu2 %v410_v59 }
 0x1d3   :  { %417 = vmatpush.bf16.xpose.msra.mxu2 %v409_v30 }
 0x1db   :  { %418 = vmatpush.bf16.xpose.msra.mxu2 %v408_v21 }
 0x1e3   :  { %419 = vmatpush.bf16.xpose.msra.mxu2 %v407_v12 }
 0x1eb   :  { %420 = vmatpush.bf16.xpose.msra.mxu2 %v406_v3 }
 0x1f3   :  { %421 = vmatpush.bf16.xpose.msra.mxu2 %v757_v58 }
 0x1fa   :  { %422 = vmatmul.bf16.vlgmr.msra.gmra.mxu2 %v413_v60 }
 0x27d   :  { %v423_v61 = vpop.f32.mrf.mxu2 }
 0x27e   :  { %v429_v62 = vadd.f32 %v428_v51, %v423_v61 }
 0x280   :  { %v430_v63 = vsub.f32 0.0, %v429_v62 }
 0x282   :  { %v431_v0 = vmul.f32 1.442695, %v430_v63 }
 0x284   :  { %566 = vpow2.f32 %v431_v0 }
 0x285   :  { %v425_v1 = vpop.f32.mrf.mxu2 }
 0x28a   :  { %v567_v2 = vpop.eup %566 }
 0x28b   :  { %v433_v4 = vadd.f32 1.0, %v567_v2 }
 0x28d   :  { %568 = vrcp.f32 %v433_v4  ;;  %v445_v6 = vand.u32 2147483648, %v433_v4  ;;  %v443_v8 = vand.u32 2147483647, %v433_v4  ;;  %vm439_vm1 = vweird.f32 %v433_v4 }
 0x28f   :  { %v446_v10 = vor.u32 1.1754944e-38, %v445_v6  ;;  %vm444_vm3 = vcmp.eq.f32.partialorder %v443_v8, 8.507059e+37 }
 0x293   :  { %v569_v3 = vpop.eup %568 }
 0x294   :  { %v435_v58 = vmul.f32 %v569_v3, %v433_v4  ;;  %vm440_vm0 = vweird.f32 %v569_v3 }
 0x295   :  { %vm441_vm2 = vmor %vm439_vm1, %vm440_vm0 }
 0x296   :  { %v436_v5 = vsub.f32 1.0, %v435_v58 }
 0x298   :  { %v437_v7 = vmul.f32 %v569_v3, %v436_v5 }
 0x29a   :  { %v438_v9 = vadd.f32 %v569_v3, %v437_v7 }
 0x29c   :  { %v442_v11 = vsel %vm441_vm2, %v569_v3, %v438_v9 }
 0x29d   :  { %v447_v12 = vsel %vm444_vm3, %v446_v10, %v442_v11 }
 0x29e   :  { %449 = vst [vmem:[#allocation9] sm:$0x1] %v447_v12 }
 0x29f   :  { %460 = dma.vmem_to_hbm [thread:$0]  %s456_s23, 16, %s458_s25, [#allocation5]  }
 0x2a0   :  { %670 = dma.done.wait [#allocation5], 16  }
 0x2a1   :  { %671 = vsyncadd [#allocation5], 4294967280 }
 0x2a2   :  { %465 = vsyncpa [#allocation4], 1 }
 0x2a3   :  { %466 = vsyncpa [#allocation7], 1 }
 0x2a4   :  { %467 = vsyncpa [#allocation5], 1 }

</bundles_post_ra>
